<compile_context>
chip_gen: v7x
topology: tpu7x:2x2x1
jax: 0.10.0
libtpu: 0.0.40
codegen_flags: <defaults>
</compile_context>

<pallas_src>
import functools

import jax
import jax.numpy as jnp
from jax.experimental import pallas as pl
from jax.experimental.pallas import tpu as pltpu


def _round_up(x, m):
    return ((x + m - 1) // m) * m


@functools.lru_cache(maxsize=1)
def _vmem_capacity_bytes():
    try:
        return int(pltpu.get_tpu_info().vmem_capacity_bytes)
    except Exception:
        return 64 * 1024 * 1024          # conservative default (v7x-sized per core)


def _largest_divisor_leq(n, limit):
    limit = max(1, min(n, limit))
    for d in range(limit, 0, -1):
        if n % d == 0:
            return d
    return 1


def _lane_block_sum(y):
    """(C, T) -> (C, 128): sum 128-wide lane blocks with plain VPU adds (T % 128 == 0)."""
    acc = y[:, 0:128]
    for k in range(1, y.shape[1] // 128):
        acc = acc + y[:, k * 128:(k + 1) * 128]
    return acc


def _factorized_reduce_kernel(xs_ref, w_ref, gb_ref, out_ref,
                              sum_ref, sq_ref, scale_ref, shift_ref,
                              *y_buf_opt, inv_m, eps, resident):
    """Two-phase fused kernel; grid = (phase, sample-block, spatial-tile), sequential.

    phase 0: relu + both stride-2 1x1 convs (tiny-K matmuls) + per-channel
             sum / sum-of-squares into lane-wide VMEM accumulators
             (y never touches HBM; optionally parked in a VMEM scratch).
    phase 1: fold the stats into per-channel scale/shift once, then write the
             normalized output (reading the VMEM-resident y, or recomputing the
             cheap convs from the input tile).
    """
    phase = pl.program_id(0)
    nb = pl.program_id(1)
    t = pl.program_id(2)
    n_sp = pl.num_programs(2)
    bn = xs_ref.shape[0]                     # samples per block (static)

    y_buf = y_buf_opt[0] if resident else None
    # flat (sample-block, spatial-tile, sample, half) slot base for y_buf
    slot0 = ((nb * n_sp + t) * bn) * 2

    def conv_pair(b):
        # relu + the two stride-2 1x1 convs as (C_half, C_in) @ (C_in, tm)
        # matmuls (the stride-2 spatial sampling is folded into the input layout).
        xe = jnp.maximum(xs_ref[b, 0], 0)
        xo = jnp.maximum(xs_ref[b, 1], 0)
        y1 = jnp.dot(w_ref[0], xe, preferred_element_type=jnp.float32)
        y2 = jnp.dot(w_ref[1], xo, preferred_element_type=jnp.float32)
        return y1, y2

    @pl.when(phase == 0)
    def _stats_phase():
        @pl.when(jnp.logical_and(nb == 0, t == 0))
        def _init():
            sum_ref[...] = jnp.zeros_like(sum_ref)
            sq_ref[...] = jnp.zeros_like(sq_ref)

        for b in range(bn):
            y1, y2 = conv_pair(b)
            # Lane-wide partial accumulators: VPU adds only (no per-tile XLU
            # reduce) and tree-like accumulation for accuracy.  Zero-padded
            # columns/samples are statistics-neutral: relu(0) = 0 -> y = 0.
            sum_ref[0] += _lane_block_sum(y1)
            sum_ref[1] += _lane_block_sum(y2)
            sq_ref[0] += _lane_block_sum(y1 * y1)
            sq_ref[1] += _lane_block_sum(y2 * y2)
            if resident:
                y_buf[slot0 + 2 * b] = y1
                y_buf[slot0 + 2 * b + 1] = y2

    @pl.when(phase == 1)
    def _apply_phase():
        @pl.when(jnp.logical_and(nb == 0, t == 0))
        def _finalize_stats():
            s = jnp.sum(sum_ref[...], axis=-1, keepdims=True)      # (2, C_half, 1)
            q = jnp.sum(sq_ref[...], axis=-1, keepdims=True)
            mean = s * inv_m
            # biased variance (training-mode BN); clamp against E[y^2]-mean^2
            # cancellation so rsqrt never sees a negative value.
            var = jnp.maximum(q * inv_m - mean * mean, 0.0)
            inv_std = jax.lax.rsqrt(var + eps)
            scale = gb_ref[0] * inv_std
            scale_ref[...] = scale
            shift_ref[...] = gb_ref[1] - mean * scale

        sc = scale_ref[...]
        sh = shift_ref[...]
        for b in range(bn):
            if resident:
                y1 = y_buf[slot0 + 2 * b]
                y2 = y_buf[slot0 + 2 * b + 1]
            else:
                y1, y2 = conv_pair(b)
            out_ref[b, 0] = (y1 * sc[0] + sh[0]).astype(out_ref.dtype)
            out_ref[b, 1] = (y2 * sc[1] + sh[1]).astype(out_ref.dtype)


@functools.partial(jax.jit,
                   static_argnames=("eps", "data_dtype", "out_dtype", "mode"))
def factorized_reduce(x_nchw, w1, w2, gamma, beta, eps=1e-5,
                      data_dtype=jnp.bfloat16, out_dtype=jnp.float32,
                      mode="auto"):
    """FactorizedReduce forward.

    x_nchw: (N, C_in, H, W), H and W even.
    w1, w2: (C_out//2, C_in) 1x1-conv weights (PyTorch layout, squeezed).
    gamma, beta: (C_out,) BatchNorm affine parameters.
    data_dtype: working dtype of conv inputs/weights (bf16 halves the HBM read
      traffic; MXU accumulation and BN statistics stay f32).
    mode: "auto" | "resident" | "recompute"  (phase-1 source of y).
    Returns (N, C_out, H//2, W//2) in out_dtype.
    """
    N, C_in, H, W = x_nchw.shape
    assert H % 2 == 0 and W % 2 == 0, "FactorizedReduce assumes even spatial dims"
    C_half, c_in_w = w1.shape
    assert c_in_w == C_in and w2.shape == (C_half, C_in)
    C_out = 2 * C_half
    assert gamma.shape == (C_out,) and beta.shape == (C_out,)
    Ho, Wo = H // 2, W // 2
    S = Ho * Wo
    M = N * S                                  # BN reduction count

    in_bytes = jnp.dtype(data_dtype).itemsize
    out_bytes = jnp.dtype(out_dtype).itemsize

    # ---- generation-aware VMEM budgets -------------------------------------
    vmem = _vmem_capacity_bytes()              # 128 MiB on v5e/v6e, 64 MiB on v7x
    tile_budget = min(48 * 1024 * 1024, vmem // 3)
    resident_cap = int(vmem * 0.70)
    headroom = 16 * 1024 * 1024

    # ---- block geometry: (BN samples) x (tm spatial columns) ---------------
    # per-column VMEM bytes of the pipelined input+output blocks (x2: double buffer)
    per_col = 2 * (2 * C_in * in_bytes + 2 * C_half * out_bytes)
    max_cols = max(128, tile_budget // per_col)
    S_pad0 = _round_up(S, 128)
    if S_pad0 <= max_cols:
        # whole per-sample spatial extent fits: grow the block over samples
        tm, S_pad = S_pad0, S_pad0
        BN = _largest_divisor_leq(N, min(32, max_cols // S_pad0))
    else:
        # large spatial extent: tile the lane axis instead
        BN = 1
        tm = 128
        for cand in (8192, 4096, 2048, 1024, 512, 256, 128):
            if cand <= max_cols and (_round_up(S, cand) - S_pad0) * 8 <= S_pad0:
                tm = cand
                break
        S_pad = _round_up(S, tm)
    num_sp = S_pad // tm
    num_nb = N // BN
    grid = (2, num_nb, num_sp)

    # ---- phase-1 source: VMEM-resident y vs. recompute from HBM ------------
    block_bytes = per_col * tm * BN
    y_buf_bytes = N * 2 * _round_up(C_half, 8) * S_pad * 4
    if mode == "resident":
        resident = True
    elif mode == "recompute":
        resident = False
    else:
        resident = (y_buf_bytes + block_bytes + headroom) <= resident_cap

    stats_bytes = (2 * 2 * _round_up(C_half, 8) * 128 + 4 * _round_up(C_half, 8)) * 4
    weights_bytes = 2 * (2 * C_half * C_in * in_bytes) + 2 * (4 * C_half * 4)
    vmem_need = block_bytes + weights_bytes + stats_bytes \
        + (y_buf_bytes if resident else 0)
    vmem_limit = int(max(32 * 1024 * 1024,
                         min(vmem_need + 8 * 1024 * 1024, vmem - 4 * 1024 * 1024)))

    # ---- fused prep: stride-2 even/odd sampling -> stacked (N, 2, C_in, S) --
    # TODO(synk): fold the stride-2 sampling into the kernel's own input DMA
    # (needs lane-strided loads); for now it is one fused slice+stack+cast pass.
    x6 = x_nchw.reshape(N, C_in, Ho, 2, Wo, 2)
    xs = jnp.stack([x6[:, :, :, 0, :, 0],            # conv_1 input: x[:, :, 0::2, 0::2]
                    x6[:, :, :, 1, :, 1]], axis=1)   # conv_2 input: x[:, :, 1::2, 1::2]
    xs = xs.reshape(N, 2, C_in, S).astype(data_dtype)
    if S_pad != S:
        # zero padding is exact: relu(0)=0 -> y=0 contributes nothing to the BN
        # sums (mean/var divide by the true M); padded columns are sliced off.
        xs = jnp.pad(xs, ((0, 0), (0, 0), (0, 0), (0, S_pad - S)))

    w = jnp.stack([w1, w2]).astype(data_dtype)                        # (2, C_half, C_in)
    gb = jnp.stack([gamma.reshape(2, C_half),
                    beta.reshape(2, C_half)]).astype(jnp.float32)     # (2, 2, C_half)
    gb = gb.reshape(2, 2, C_half, 1)

    if resident:
        # Phase 1 reads y from the VMEM scratch, so park the input spec on
        # block 0 during phase 1 (no HBM re-read of xs).
        xs_map = lambda p, i, t: (i * (1 - p), 0, 0, t * (1 - p))
    else:
        xs_map = lambda p, i, t: (i, 0, 0, t)

    kernel = functools.partial(_factorized_reduce_kernel,
                               inv_m=1.0 / M, eps=eps, resident=resident)

    scratch = [
        pltpu.VMEM((2, C_half, 128), jnp.float32),   # lane-partial per-channel sum
        pltpu.VMEM((2, C_half, 128), jnp.float32),   # lane-partial per-channel sum sq
        pltpu.VMEM((2, C_half, 1), jnp.float32),     # BN scale
        pltpu.VMEM((2, C_half, 1), jnp.float32),     # BN shift
    ]
    if resident:
        scratch.append(
            pltpu.VMEM((num_nb * num_sp * BN * 2, C_half, tm), jnp.float32))

    # NOTE: the output index_map must stay parked on block (0,...) for the whole
    # stats phase (p == 0) and for the first apply step, so the never-written
    # output buffer is not flushed to HBM before phase 1 fills it.
    out_raw = pl.pallas_call(
        kernel,
        out_shape=jax.ShapeDtypeStruct((N, 2, C_half, S_pad), out_dtype),
        grid_spec=pltpu.PrefetchScalarGridSpec(
            num_scalar_prefetch=0,
            grid=grid,                                 # (phase, sample-block, lane tile)
            in_specs=[
                pl.BlockSpec((BN, 2, C_in, tm), xs_map),
                pl.BlockSpec((2, C_half, C_in), lambda p, i, t: (0, 0, 0)),
                pl.BlockSpec((2, 2, C_half, 1), lambda p, i, t: (0, 0, 0, 0)),
            ],
            out_specs=pl.BlockSpec((BN, 2, C_half, tm),
                                   lambda p, i, t: (i * p, 0, 0, t * p)),
            scratch_shapes=scratch,
        ),
        # TODO(synk): on v7x, split the sample-block axis across the two
        # TensorCores with per-core partial stats and a cross-core combine at
        # the phase boundary; the shared VMEM accumulators keep this kernel on
        # a single core for now (a no-op on v5e/v6e).
        compiler_params=pltpu.CompilerParams(
            dimension_semantics=("arbitrary", "arbitrary", "arbitrary"),
            vmem_limit_bytes=vmem_limit,
        ),
    )(xs, w, gb)

    out = out_raw if S_pad == S else out_raw[..., :S]
    # (N, 2, C_half, S) -> (N, C_out, Ho, Wo): a free, contiguous reshape only.
    return out.reshape(N, C_out, Ho, Wo)


def _reference(x, w1, w2, gamma, beta, eps=1e-5):
    """Pure-JAX reference of the PyTorch forward (training-mode BatchNorm)."""
    xr = jnp.maximum(x, 0.0)
    xe = xr[:, :, 0::2, 0::2]
    xo = xr[:, :, 1::2, 1::2]
    y1 = jnp.einsum("oc,nchw->nohw", w1, xe)
    y2 = jnp.einsum("oc,nchw->nohw", w2, xo)
    y = jnp.concatenate([y1, y2], axis=1)
    mean = jnp.mean(y, axis=(0, 2, 3), keepdims=True)
    var = jnp.var(y, axis=(0, 2, 3), keepdims=True)    # biased variance
    yhat = (y - mean) * jax.lax.rsqrt(var + eps)
    return yhat * gamma.reshape(1, -1, 1, 1) + beta.reshape(1, -1, 1, 1)


if __name__ == "__main__":
    # Small, module-consistent shapes: N=2, C_in=4, H=W=16, C_out=8.
    N, C_in, H, W = 2, 4, 16, 16
    C_out = 8
    key = jax.random.PRNGKey(0)
    kx, k1, k2 = jax.random.split(key, 3)

    x = jax.random.normal(kx, (N, C_in, H, W), dtype=jnp.float32)
    # PyTorch Conv2d(C_in, C_out//2, 1, stride=2, bias=False) weights, squeezed
    # to (C_out//2, C_in).
    w1 = jax.random.normal(k1, (C_out // 2, C_in), dtype=jnp.float32) * 0.1
    w2 = jax.random.normal(k2, (C_out // 2, C_in), dtype=jnp.float32) * 0.1
    # BatchNorm2d(affine=True) fresh init: gamma = 1, beta = 0.
    gamma = jnp.ones((C_out,), dtype=jnp.float32)
    beta = jnp.zeros((C_out,), dtype=jnp.float32)

    ref = jax.block_until_ready(_reference(x, w1, w2, gamma, beta))

    # Default path: bf16 data, auto mode (VMEM-resident y at this footprint).
    out = jax.block_until_ready(factorized_reduce(x, w1, w2, gamma, beta))
    assert out.shape == (N, C_out, H // 2, W // 2), out.shape
    err_bf16 = float(jnp.max(jnp.abs(out - ref)))
    assert jnp.allclose(out, ref, atol=1e-1, rtol=1e-1), \
        f"bf16 max abs err = {err_bf16}"

    # f32 data + forced recompute mode (exercises the non-resident kernel path).
    out32 = jax.block_until_ready(
        factorized_reduce(x, w1, w2, gamma, beta,
                          data_dtype=jnp.float32, mode="recompute"))
    err_f32 = float(jnp.max(jnp.abs(out32 - ref)))
    assert jnp.allclose(out32, ref, atol=2e-3, rtol=2e-3), \
        f"f32 max abs err = {err_f32}"

    print("KERNEL_OK")
</pallas_src>

<mosaic_0001>
module attributes {stable_mosaic.version = 11 : i64} {
  func.func @_factorized_reduce_kernel(%arg0: i32, %arg1: i32, %arg2: i32, %arg3: memref<2x2x4x128xbf16, #tpu.memory_space<vmem>>, %arg4: memref<2x4x4xbf16, #tpu.memory_space<vmem>>, %arg5: memref<2x2x4x1xf32, #tpu.memory_space<vmem>>, %arg6: memref<2x2x4x128xf32, #tpu.memory_space<vmem>>, %arg7: memref<2x4x128xf32, #tpu.memory_space<vmem>>, %arg8: memref<2x4x128xf32, #tpu.memory_space<vmem>>, %arg9: memref<2x4x1xf32, #tpu.memory_space<vmem>>, %arg10: memref<2x4x1xf32, #tpu.memory_space<vmem>>, %arg11: memref<4x4x128xf32, #tpu.memory_space<vmem>>) attributes {dimension_semantics = [#tpu.dimension_semantics<arbitrary>, #tpu.dimension_semantics<arbitrary>, #tpu.dimension_semantics<arbitrary>], iteration_bounds = array<i64: 2, 1, 1>, scalar_prefetch = 0 : i64, scratch_operands = 5 : i64, tpu.core_type = #tpu.core_type<tc>, window_params = [{transform_indices = @transform_0, window_bounds = array<i64: 2, 2, 4, 128>}, {pipeline_mode = #tpu.pipeline_mode<synchronous>, transform_indices = @transform_1, window_bounds = array<i64: 2, 4, 4>}, {pipeline_mode = #tpu.pipeline_mode<synchronous>, transform_indices = @transform_2, window_bounds = array<i64: 2, 2, 4, 1>}, {transform_indices = @transform_3, window_bounds = array<i64: 2, 2, 4, 128>}]} {
    %c1_i32 = arith.constant 1 : i32
    %0 = arith.muli %arg1, %c1_i32 : i32
    %1 = arith.addi %0, %arg2 : i32
    %c2_i32 = arith.constant 2 : i32
    %2 = arith.muli %1, %c2_i32 : i32
    %c2_i32_0 = arith.constant 2 : i32
    %3 = arith.muli %2, %c2_i32_0 : i32
    %c0_i32 = arith.constant 0 : i32
    %4 = arith.cmpi eq, %arg0, %c0_i32 : i32
    %5 = arith.extui %4 : i1 to i32
    %c0_i32_1 = arith.constant 0 : i32
    %6 = arith.cmpi ne, %5, %c0_i32_1 : i32
    scf.if %6 {
      %c0_i32_4 = arith.constant 0 : i32
      %10 = arith.cmpi eq, %arg1, %c0_i32_4 : i32
      %c0_i32_5 = arith.constant 0 : i32
      %11 = arith.cmpi eq, %arg2, %c0_i32_5 : i32
      %12 = arith.andi %10, %11 : i1
      %13 = arith.extui %12 : i1 to i32
      %c0_i32_6 = arith.constant 0 : i32
      %14 = arith.cmpi ne, %13, %c0_i32_6 : i32
      scf.if %14 {
        %cst_102 = arith.constant 0.000000e+00 : f32
        %117 = vector.broadcast %cst_102 : f32 to vector<2x4x128xf32>
        %c0_103 = arith.constant 0 : index
        %c0_104 = arith.constant 0 : index
        %c0_105 = arith.constant 0 : index
        %118 = vector.load %arg7[%c0_103, %c0_104, %c0_105] : memref<2x4x128xf32, #tpu.memory_space<vmem>>, vector<2x4x128xf32>
        tpu.vector_store %arg7[%c0_103, %c0_104, %c0_105], %117 {strides = array<i32>} : memref<2x4x128xf32, #tpu.memory_space<vmem>>, vector<2x4x128xf32>,
        %cst_106 = arith.constant 0.000000e+00 : f32
        %119 = vector.broadcast %cst_106 : f32 to vector<2x4x128xf32>
        %c0_107 = arith.constant 0 : index
        %c0_108 = arith.constant 0 : index
        %c0_109 = arith.constant 0 : index
        %120 = vector.load %arg8[%c0_107, %c0_108, %c0_109] : memref<2x4x128xf32, #tpu.memory_space<vmem>>, vector<2x4x128xf32>
        tpu.vector_store %arg8[%c0_107, %c0_108, %c0_109], %119 {strides = array<i32>} : memref<2x4x128xf32, #tpu.memory_space<vmem>>, vector<2x4x128xf32>,
      } else {
      }
      %c0 = arith.constant 0 : index
      %c0_7 = arith.constant 0 : index
      %c0_8 = arith.constant 0 : index
      %c0_9 = arith.constant 0 : index
      %15 = vector.load %arg3[%c0, %c0_7, %c0_8, %c0_9] : memref<2x2x4x128xbf16, #tpu.memory_space<vmem>>, vector<1x1x4x128xbf16>
      %16 = vector.shape_cast %15 : vector<1x1x4x128xbf16> to vector<4x128xbf16>
      %cst = arith.constant 0.000000e+00 : bf16
      %17 = vector.broadcast %cst : bf16 to vector<4x128xbf16>
      %18 = arith.maximumf %16, %17 : vector<4x128xbf16>
      %c0_10 = arith.constant 0 : index
      %c1 = arith.constant 1 : index
      %c0_11 = arith.constant 0 : index
      %c0_12 = arith.constant 0 : index
      %19 = vector.load %arg3[%c0_10, %c1, %c0_11, %c0_12] : memref<2x2x4x128xbf16, #tpu.memory_space<vmem>>, vector<1x1x4x128xbf16>
      %20 = vector.shape_cast %19 : vector<1x1x4x128xbf16> to vector<4x128xbf16>
      %cst_13 = arith.constant 0.000000e+00 : bf16
      %21 = vector.broadcast %cst_13 : bf16 to vector<4x128xbf16>
      %22 = arith.maximumf %20, %21 : vector<4x128xbf16>
      %c0_14 = arith.constant 0 : index
      %c0_15 = arith.constant 0 : index
      %c0_16 = arith.constant 0 : index
      %23 = vector.load %arg4[%c0_14, %c0_15, %c0_16] : memref<2x4x4xbf16, #tpu.memory_space<vmem>>, vector<1x4x4xbf16>
      %24 = vector.shape_cast %23 : vector<1x4x4xbf16> to vector<4x4xbf16>
      %cst_17 = arith.constant dense<0.000000e+00> : vector<4x128xf32>
      %25 = tpu.matmul %24, %18, %cst_17 {dimension_numbers = #tpu.dot_dimension_numbers<[1], [0], [0], [1], [0, 0, 1, 1], [], []>} : vector<4x4xbf16>, vector<4x128xbf16>, vector<4x128xf32> -> vector<4x128xf32>
      %c1_18 = arith.constant 1 : index
      %c0_19 = arith.constant 0 : index
      %c0_20 = arith.constant 0 : index
      %26 = vector.load %arg4[%c1_18, %c0_19, %c0_20] : memref<2x4x4xbf16, #tpu.memory_space<vmem>>, vector<1x4x4xbf16>
      %27 = vector.shape_cast %26 : vector<1x4x4xbf16> to vector<4x4xbf16>
      %cst_21 = arith.constant dense<0.000000e+00> : vector<4x128xf32>
      %28 = tpu.matmul %27, %22, %cst_21 {dimension_numbers = #tpu.dot_dimension_numbers<[1], [0], [0], [1], [0, 0, 1, 1], [], []>} : vector<4x4xbf16>, vector<4x128xbf16>, vector<4x128xf32> -> vector<4x128xf32>
      %c0_22 = arith.constant 0 : index
      %c0_23 = arith.constant 0 : index
      %c0_24 = arith.constant 0 : index
      %29 = vector.load %arg7[%c0_22, %c0_23, %c0_24] : memref<2x4x128xf32, #tpu.memory_space<vmem>>, vector<1x4x128xf32>
      %30 = vector.shape_cast %29 : vector<1x4x128xf32> to vector<4x128xf32>
      %31 = arith.addf %30, %25 : vector<4x128xf32>
      %c0_25 = arith.constant 0 : index
      %c0_26 = arith.constant 0 : index
      %c0_27 = arith.constant 0 : index
      %32 = vector.load %arg7[%c0_25, %c0_26, %c0_27] : memref<2x4x128xf32, #tpu.memory_space<vmem>>, vector<1x4x128xf32>
      %33 = vector.shape_cast %32 : vector<1x4x128xf32> to vector<4x128xf32>
      %34 = vector.shape_cast %31 : vector<4x128xf32> to vector<1x4x128xf32>
      tpu.vector_store %arg7[%c0_25, %c0_26, %c0_27], %34 {strides = array<i32>} : memref<2x4x128xf32, #tpu.memory_space<vmem>>, vector<1x4x128xf32>,
      %c1_28 = arith.constant 1 : index
      %c0_29 = arith.constant 0 : index
      %c0_30 = arith.constant 0 : index
      %35 = vector.load %arg7[%c1_28, %c0_29, %c0_30] : memref<2x4x128xf32, #tpu.memory_space<vmem>>, vector<1x4x128xf32>
      %36 = vector.shape_cast %35 : vector<1x4x128xf32> to vector<4x128xf32>
      %37 = arith.addf %36, %28 : vector<4x128xf32>
      %c1_31 = arith.constant 1 : index
      %c0_32 = arith.constant 0 : index
      %c0_33 = arith.constant 0 : index
      %38 = vector.load %arg7[%c1_31, %c0_32, %c0_33] : memref<2x4x128xf32, #tpu.memory_space<vmem>>, vector<1x4x128xf32>
      %39 = vector.shape_cast %38 : vector<1x4x128xf32> to vector<4x128xf32>
      %40 = vector.shape_cast %37 : vector<4x128xf32> to vector<1x4x128xf32>
      tpu.vector_store %arg7[%c1_31, %c0_32, %c0_33], %40 {strides = array<i32>} : memref<2x4x128xf32, #tpu.memory_space<vmem>>, vector<1x4x128xf32>,
      %c0_34 = arith.constant 0 : index
      %c0_35 = arith.constant 0 : index
      %c0_36 = arith.constant 0 : index
      %41 = vector.load %arg8[%c0_34, %c0_35, %c0_36] : memref<2x4x128xf32, #tpu.memory_space<vmem>>, vector<1x4x128xf32>
      %42 = vector.shape_cast %41 : vector<1x4x128xf32> to vector<4x128xf32>
      %43 = arith.mulf %25, %25 : vector<4x128xf32>
      %44 = arith.addf %42, %43 : vector<4x128xf32>
      %c0_37 = arith.constant 0 : index
      %c0_38 = arith.constant 0 : index
      %c0_39 = arith.constant 0 : index
      %45 = vector.load %arg8[%c0_37, %c0_38, %c0_39] : memref<2x4x128xf32, #tpu.memory_space<vmem>>, vector<1x4x128xf32>
      %46 = vector.shape_cast %45 : vector<1x4x128xf32> to vector<4x128xf32>
      %47 = vector.shape_cast %44 : vector<4x128xf32> to vector<1x4x128xf32>
      tpu.vector_store %arg8[%c0_37, %c0_38, %c0_39], %47 {strides = array<i32>} : memref<2x4x128xf32, #tpu.memory_space<vmem>>, vector<1x4x128xf32>,
      %c1_40 = arith.constant 1 : index
      %c0_41 = arith.constant 0 : index
      %c0_42 = arith.constant 0 : index
      %48 = vector.load %arg8[%c1_40, %c0_41, %c0_42] : memref<2x4x128xf32, #tpu.memory_space<vmem>>, vector<1x4x128xf32>
      %49 = vector.shape_cast %48 : vector<1x4x128xf32> to vector<4x128xf32>
      %50 = arith.mulf %28, %28 : vector<4x128xf32>
      %51 = arith.addf %49, %50 : vector<4x128xf32>
      %c1_43 = arith.constant 1 : index
      %c0_44 = arith.constant 0 : index
      %c0_45 = arith.constant 0 : index
      %52 = vector.load %arg8[%c1_43, %c0_44, %c0_45] : memref<2x4x128xf32, #tpu.memory_space<vmem>>, vector<1x4x128xf32>
      %53 = vector.shape_cast %52 : vector<1x4x128xf32> to vector<4x128xf32>
      %54 = vector.shape_cast %51 : vector<4x128xf32> to vector<1x4x128xf32>
      tpu.vector_store %arg8[%c1_43, %c0_44, %c0_45], %54 {strides = array<i32>} : memref<2x4x128xf32, #tpu.memory_space<vmem>>, vector<1x4x128xf32>,
      %c0_i32_46 = arith.constant 0 : i32
      %55 = arith.addi %3, %c0_i32_46 : i32
      %56 = arith.index_cast %55 : i32 to index
      %c0_47 = arith.constant 0 : index
      %c0_48 = arith.constant 0 : index
      %57 = vector.load %arg11[%56, %c0_47, %c0_48] : memref<4x4x128xf32, #tpu.memory_space<vmem>>, vector<1x4x128xf32>
      %58 = vector.shape_cast %57 : vector<1x4x128xf32> to vector<4x128xf32>
      %59 = vector.shape_cast %25 : vector<4x128xf32> to vector<1x4x128xf32>
      tpu.vector_store %arg11[%56, %c0_47, %c0_48], %59 {strides = array<i32>} : memref<4x4x128xf32, #tpu.memory_space<vmem>>, vector<1x4x128xf32>,
      %c0_i32_49 = arith.constant 0 : i32
      %60 = arith.addi %3, %c0_i32_49 : i32
      %c1_i32_50 = arith.constant 1 : i32
      %61 = arith.addi %60, %c1_i32_50 : i32
      %62 = arith.index_cast %61 : i32 to index
      %c0_51 = arith.constant 0 : index
      %c0_52 = arith.constant 0 : index
      %63 = vector.load %arg11[%62, %c0_51, %c0_52] : memref<4x4x128xf32, #tpu.memory_space<vmem>>, vector<1x4x128xf32>
      %64 = vector.shape_cast %63 : vector<1x4x128xf32> to vector<4x128xf32>
      %65 = vector.shape_cast %28 : vector<4x128xf32> to vector<1x4x128xf32>
      tpu.vector_store %arg11[%62, %c0_51, %c0_52], %65 {strides = array<i32>} : memref<4x4x128xf32, #tpu.memory_space<vmem>>, vector<1x4x128xf32>,
      %c1_53 = arith.constant 1 : index
      %c0_54 = arith.constant 0 : index
      %c0_55 = arith.constant 0 : index
      %c0_56 = arith.constant 0 : index
      %66 = vector.load %arg3[%c1_53, %c0_54, %c0_55, %c0_56] : memref<2x2x4x128xbf16, #tpu.memory_space<vmem>>, vector<1x1x4x128xbf16>
      %67 = vector.shape_cast %66 : vector<1x1x4x128xbf16> to vector<4x128xbf16>
      %cst_57 = arith.constant 0.000000e+00 : bf16
      %68 = vector.broadcast %cst_57 : bf16 to vector<4x128xbf16>
      %69 = arith.maximumf %67, %68 : vector<4x128xbf16>
      %c1_58 = arith.constant 1 : index
      %c1_59 = arith.constant 1 : index
      %c0_60 = arith.constant 0 : index
      %c0_61 = arith.constant 0 : index
      %70 = vector.load %arg3[%c1_58, %c1_59, %c0_60, %c0_61] : memref<2x2x4x128xbf16, #tpu.memory_space<vmem>>, vector<1x1x4x128xbf16>
      %71 = vector.shape_cast %70 : vector<1x1x4x128xbf16> to vector<4x128xbf16>
      %cst_62 = arith.constant 0.000000e+00 : bf16
      %72 = vector.broadcast %cst_62 : bf16 to vector<4x128xbf16>
      %73 = arith.maximumf %71, %72 : vector<4x128xbf16>
      %c0_63 = arith.constant 0 : index
      %c0_64 = arith.constant 0 : index
      %c0_65 = arith.constant 0 : index
      %74 = vector.load %arg4[%c0_63, %c0_64, %c0_65] : memref<2x4x4xbf16, #tpu.memory_space<vmem>>, vector<1x4x4xbf16>
      %75 = vector.shape_cast %74 : vector<1x4x4xbf16> to vector<4x4xbf16>
      %cst_66 = arith.constant dense<0.000000e+00> : vector<4x128xf32>
      %76 = tpu.matmul %75, %69, %cst_66 {dimension_numbers = #tpu.dot_dimension_numbers<[1], [0], [0], [1], [0, 0, 1, 1], [], []>} : vector<4x4xbf16>, vector<4x128xbf16>, vector<4x128xf32> -> vector<4x128xf32>
      %c1_67 = arith.constant 1 : index
      %c0_68 = arith.constant 0 : index
      %c0_69 = arith.constant 0 : index
      %77 = vector.load %arg4[%c1_67, %c0_68, %c0_69] : memref<2x4x4xbf16, #tpu.memory_space<vmem>>, vector<1x4x4xbf16>
      %78 = vector.shape_cast %77 : vector<1x4x4xbf16> to vector<4x4xbf16>
      %cst_70 = arith.constant dense<0.000000e+00> : vector<4x128xf32>
      %79 = tpu.matmul %78, %73, %cst_70 {dimension_numbers = #tpu.dot_dimension_numbers<[1], [0], [0], [1], [0, 0, 1, 1], [], []>} : vector<4x4xbf16>, vector<4x128xbf16>, vector<4x128xf32> -> vector<4x128xf32>
      %c0_71 = arith.constant 0 : index
      %c0_72 = arith.constant 0 : index
      %c0_73 = arith.constant 0 : index
      %80 = vector.load %arg7[%c0_71, %c0_72, %c0_73] : memref<2x4x128xf32, #tpu.memory_space<vmem>>, vector<1x4x128xf32>
      %81 = vector.shape_cast %80 : vector<1x4x128xf32> to vector<4x128xf32>
      %82 = arith.addf %81, %76 : vector<4x128xf32>
      %c0_74 = arith.constant 0 : index
      %c0_75 = arith.constant 0 : index
      %c0_76 = arith.constant 0 : index
      %83 = vector.load %arg7[%c0_74, %c0_75, %c0_76] : memref<2x4x128xf32, #tpu.memory_space<vmem>>, vector<1x4x128xf32>
      %84 = vector.shape_cast %83 : vector<1x4x128xf32> to vector<4x128xf32>
      %85 = vector.shape_cast %82 : vector<4x128xf32> to vector<1x4x128xf32>
      tpu.vector_store %arg7[%c0_74, %c0_75, %c0_76], %85 {strides = array<i32>} : memref<2x4x128xf32, #tpu.memory_space<vmem>>, vector<1x4x128xf32>,
      %c1_77 = arith.constant 1 : index
      %c0_78 = arith.constant 0 : index
      %c0_79 = arith.constant 0 : index
      %86 = vector.load %arg7[%c1_77, %c0_78, %c0_79] : memref<2x4x128xf32, #tpu.memory_space<vmem>>, vector<1x4x128xf32>
      %87 = vector.shape_cast %86 : vector<1x4x128xf32> to vector<4x128xf32>
      %88 = arith.addf %87, %79 : vector<4x128xf32>
      %c1_80 = arith.constant 1 : index
      %c0_81 = arith.constant 0 : index
      %c0_82 = arith.constant 0 : index
      %89 = vector.load %arg7[%c1_80, %c0_81, %c0_82] : memref<2x4x128xf32, #tpu.memory_space<vmem>>, vector<1x4x128xf32>
      %90 = vector.shape_cast %89 : vector<1x4x128xf32> to vector<4x128xf32>
      %91 = vector.shape_cast %88 : vector<4x128xf32> to vector<1x4x128xf32>
      tpu.vector_store %arg7[%c1_80, %c0_81, %c0_82], %91 {strides = array<i32>} : memref<2x4x128xf32, #tpu.memory_space<vmem>>, vector<1x4x128xf32>,
      %c0_83 = arith.constant 0 : index
      %c0_84 = arith.constant 0 : index
      %c0_85 = arith.constant 0 : index
      %92 = vector.load %arg8[%c0_83, %c0_84, %c0_85] : memref<2x4x128xf32, #tpu.memory_space<vmem>>, vector<1x4x128xf32>
      %93 = vector.shape_cast %92 : vector<1x4x128xf32> to vector<4x128xf32>
      %94 = arith.mulf %76, %76 : vector<4x128xf32>
      %95 = arith.addf %93, %94 : vector<4x128xf32>
      %c0_86 = arith.constant 0 : index
      %c0_87 = arith.constant 0 : index
      %c0_88 = arith.constant 0 : index
      %96 = vector.load %arg8[%c0_86, %c0_87, %c0_88] : memref<2x4x128xf32, #tpu.memory_space<vmem>>, vector<1x4x128xf32>
      %97 = vector.shape_cast %96 : vector<1x4x128xf32> to vector<4x128xf32>
      %98 = vector.shape_cast %95 : vector<4x128xf32> to vector<1x4x128xf32>
      tpu.vector_store %arg8[%c0_86, %c0_87, %c0_88], %98 {strides = array<i32>} : memref<2x4x128xf32, #tpu.memory_space<vmem>>, vector<1x4x128xf32>,
      %c1_89 = arith.constant 1 : index
      %c0_90 = arith.constant 0 : index
      %c0_91 = arith.constant 0 : index
      %99 = vector.load %arg8[%c1_89, %c0_90, %c0_91] : memref<2x4x128xf32, #tpu.memory_space<vmem>>, vector<1x4x128xf32>
      %100 = vector.shape_cast %99 : vector<1x4x128xf32> to vector<4x128xf32>
      %101 = arith.mulf %79, %79 : vector<4x128xf32>
      %102 = arith.addf %100, %101 : vector<4x128xf32>
      %c1_92 = arith.constant 1 : index
      %c0_93 = arith.constant 0 : index
      %c0_94 = arith.constant 0 : index
      %103 = vector.load %arg8[%c1_92, %c0_93, %c0_94] : memref<2x4x128xf32, #tpu.memory_space<vmem>>, vector<1x4x128xf32>
      %104 = vector.shape_cast %103 : vector<1x4x128xf32> to vector<4x128xf32>
      %105 = vector.shape_cast %102 : vector<4x128xf32> to vector<1x4x128xf32>
      tpu.vector_store %arg8[%c1_92, %c0_93, %c0_94], %105 {strides = array<i32>} : memref<2x4x128xf32, #tpu.memory_space<vmem>>, vector<1x4x128xf32>,
      %c2_i32_95 = arith.constant 2 : i32
      %106 = arith.addi %3, %c2_i32_95 : i32
      %107 = arith.index_cast %106 : i32 to index
      %c0_96 = arith.constant 0 : index
      %c0_97 = arith.constant 0 : index
      %108 = vector.load %arg11[%107, %c0_96, %c0_97] : memref<4x4x128xf32, #tpu.memory_space<vmem>>, vector<1x4x128xf32>
      %109 = vector.shape_cast %108 : vector<1x4x128xf32> to vector<4x128xf32>
      %110 = vector.shape_cast %76 : vector<4x128xf32> to vector<1x4x128xf32>
      tpu.vector_store %arg11[%107, %c0_96, %c0_97], %110 {strides = array<i32>} : memref<4x4x128xf32, #tpu.memory_space<vmem>>, vector<1x4x128xf32>,
      %c2_i32_98 = arith.constant 2 : i32
      %111 = arith.addi %3, %c2_i32_98 : i32
      %c1_i32_99 = arith.constant 1 : i32
      %112 = arith.addi %111, %c1_i32_99 : i32
      %113 = arith.index_cast %112 : i32 to index
      %c0_100 = arith.constant 0 : index
      %c0_101 = arith.constant 0 : index
      %114 = vector.load %arg11[%113, %c0_100, %c0_101] : memref<4x4x128xf32, #tpu.memory_space<vmem>>, vector<1x4x128xf32>
      %115 = vector.shape_cast %114 : vector<1x4x128xf32> to vector<4x128xf32>
      %116 = vector.shape_cast %79 : vector<4x128xf32> to vector<1x4x128xf32>
      tpu.vector_store %arg11[%113, %c0_100, %c0_101], %116 {strides = array<i32>} : memref<4x4x128xf32, #tpu.memory_space<vmem>>, vector<1x4x128xf32>,
    } else {
    }
    %c1_i32_2 = arith.constant 1 : i32
    %7 = arith.cmpi eq, %arg0, %c1_i32_2 : i32
    %8 = arith.extui %7 : i1 to i32
    %c0_i32_3 = arith.constant 0 : i32
    %9 = arith.cmpi ne, %8, %c0_i32_3 : i32
    scf.if %9 {
      %c0_i32_4 = arith.constant 0 : i32
      %10 = arith.cmpi eq, %arg1, %c0_i32_4 : i32
      %c0_i32_5 = arith.constant 0 : i32
      %11 = arith.cmpi eq, %arg2, %c0_i32_5 : i32
      %12 = arith.andi %10, %11 : i1
      %13 = arith.extui %12 : i1 to i32
      %c0_i32_6 = arith.constant 0 : i32
      %14 = arith.cmpi ne, %13, %c0_i32_6 : i32
      scf.if %14 {
        %c0_41 = arith.constant 0 : index
        %c0_42 = arith.constant 0 : index
        %c0_43 = arith.constant 0 : index
        %79 = vector.load %arg7[%c0_41, %c0_42, %c0_43] : memref<2x4x128xf32, #tpu.memory_space<vmem>>, vector<2x4x128xf32>
        %cst = arith.constant dense<0.000000e+00> : vector<2x4xf32>
        %80 = vector.multi_reduction <add>, %79, %cst [2] : vector<2x4x128xf32> to vector<2x4xf32>
        %81 = vector.shape_cast %80 : vector<2x4xf32> to vector<2x4x1xf32>
        %c0_44 = arith.constant 0 : index
        %c0_45 = arith.constant 0 : index
        %c0_46 = arith.constant 0 : index
        %82 = vector.load %arg8[%c0_44, %c0_45, %c0_46] : memref<2x4x128xf32, #tpu.memory_space<vmem>>, vector<2x4x128xf32>
        %cst_47 = arith.constant dense<0.000000e+00> : vector<2x4xf32>
        %83 = vector.multi_reduction <add>, %82, %cst_47 [2] : vector<2x4x128xf32> to vector<2x4xf32>
        %84 = vector.shape_cast %83 : vector<2x4xf32> to vector<2x4x1xf32>
        %cst_48 = arith.constant 7.812500e-03 : f32
        %85 = vector.broadcast %cst_48 : f32 to vector<2x4x1xf32>
        %86 = arith.mulf %81, %85 : vector<2x4x1xf32>
        %cst_49 = arith.constant 7.812500e-03 : f32
        %87 = vector.broadcast %cst_49 : f32 to vector<2x4x1xf32>
        %88 = arith.mulf %84, %87 : vector<2x4x1xf32>
        %89 = arith.mulf %86, %86 : vector<2x4x1xf32>
        %90 = arith.subf %88, %89 : vector<2x4x1xf32>
        %cst_50 = arith.constant 0.000000e+00 : f32
        %91 = vector.broadcast %cst_50 : f32 to vector<2x4x1xf32>
        %92 = arith.maximumf %90, %91 : vector<2x4x1xf32>
        %cst_51 = arith.constant 9.99999974E-6 : f32
        %93 = vector.broadcast %cst_51 : f32 to vector<2x4x1xf32>
        %94 = arith.addf %92, %93 : vector<2x4x1xf32>
        %95 = math.rsqrt %94 : vector<2x4x1xf32>
        %c0_52 = arith.constant 0 : index
        %c0_53 = arith.constant 0 : index
        %c0_54 = arith.constant 0 : index
        %c0_55 = arith.constant 0 : index
        %96 = vector.load %arg5[%c0_52, %c0_53, %c0_54, %c0_55] : memref<2x2x4x1xf32, #tpu.memory_space<vmem>>, vector<1x2x4x1xf32>
        %97 = vector.shape_cast %96 : vector<1x2x4x1xf32> to vector<2x4x1xf32>
        %98 = arith.mulf %97, %95 : vector<2x4x1xf32>
        %c0_56 = arith.constant 0 : index
        %c0_57 = arith.constant 0 : index
        %c0_58 = arith.constant 0 : index
        %99 = vector.load %arg9[%c0_56, %c0_57, %c0_58] : memref<2x4x1xf32, #tpu.memory_space<vmem>>, vector<2x4x1xf32>
        tpu.vector_store %arg9[%c0_56, %c0_57, %c0_58], %98 {strides = array<i32>} : memref<2x4x1xf32, #tpu.memory_space<vmem>>, vector<2x4x1xf32>,
        %c1_59 = arith.constant 1 : index
        %c0_60 = arith.constant 0 : index
        %c0_61 = arith.constant 0 : index
        %c0_62 = arith.constant 0 : index
        %100 = vector.load %arg5[%c1_59, %c0_60, %c0_61, %c0_62] : memref<2x2x4x1xf32, #tpu.memory_space<vmem>>, vector<1x2x4x1xf32>
        %101 = vector.shape_cast %100 : vector<1x2x4x1xf32> to vector<2x4x1xf32>
        %102 = arith.mulf %86, %98 : vector<2x4x1xf32>
        %103 = arith.subf %101, %102 : vector<2x4x1xf32>
        %c0_63 = arith.constant 0 : index
        %c0_64 = arith.constant 0 : index
        %c0_65 = arith.constant 0 : index
        %104 = vector.load %arg10[%c0_63, %c0_64, %c0_65] : memref<2x4x1xf32, #tpu.memory_space<vmem>>, vector<2x4x1xf32>
        tpu.vector_store %arg10[%c0_63, %c0_64, %c0_65], %103 {strides = array<i32>} : memref<2x4x1xf32, #tpu.memory_space<vmem>>, vector<2x4x1xf32>,
      } else {
      }
      %c0 = arith.constant 0 : index
      %c0_7 = arith.constant 0 : index
      %c0_8 = arith.constant 0 : index
      %15 = vector.load %arg9[%c0, %c0_7, %c0_8] : memref<2x4x1xf32, #tpu.memory_space<vmem>>, vector<2x4x1xf32>
      %c0_9 = arith.constant 0 : index
      %c0_10 = arith.constant 0 : index
      %c0_11 = arith.constant 0 : index
      %16 = vector.load %arg10[%c0_9, %c0_10, %c0_11] : memref<2x4x1xf32, #tpu.memory_space<vmem>>, vector<2x4x1xf32>
      %c0_i32_12 = arith.constant 0 : i32
      %17 = arith.addi %3, %c0_i32_12 : i32
      %18 = arith.index_cast %17 : i32 to index
      %c0_13 = arith.constant 0 : index
      %c0_14 = arith.constant 0 : index
      %19 = vector.load %arg11[%18, %c0_13, %c0_14] : memref<4x4x128xf32, #tpu.memory_space<vmem>>, vector<1x4x128xf32>
      %20 = vector.shape_cast %19 : vector<1x4x128xf32> to vector<4x128xf32>
      %c0_i32_15 = arith.constant 0 : i32
      %21 = arith.addi %3, %c0_i32_15 : i32
      %c1_i32_16 = arith.constant 1 : i32
      %22 = arith.addi %21, %c1_i32_16 : i32
      %23 = arith.index_cast %22 : i32 to index
      %c0_17 = arith.constant 0 : index
      %c0_18 = arith.constant 0 : index
      %24 = vector.load %arg11[%23, %c0_17, %c0_18] : memref<4x4x128xf32, #tpu.memory_space<vmem>>, vector<1x4x128xf32>
      %25 = vector.shape_cast %24 : vector<1x4x128xf32> to vector<4x128xf32>
      %26 = vector.extract_strided_slice %15 {offsets = [0, 0, 0], sizes = [1, 4, 1], strides = [1, 1, 1]} : vector<2x4x1xf32> to vector<1x4x1xf32>
      %27 = vector.shape_cast %26 : vector<1x4x1xf32> to vector<4x1xf32>
      %28 = vector.broadcast %27 : vector<4x1xf32> to vector<4x128xf32>
      %29 = arith.mulf %20, %28 : vector<4x128xf32>
      %30 = vector.extract_strided_slice %16 {offsets = [0, 0, 0], sizes = [1, 4, 1], strides = [1, 1, 1]} : vector<2x4x1xf32> to vector<1x4x1xf32>
      %31 = vector.shape_cast %30 : vector<1x4x1xf32> to vector<4x1xf32>
      %32 = vector.broadcast %31 : vector<4x1xf32> to vector<4x128xf32>
      %33 = arith.addf %29, %32 : vector<4x128xf32>
      %c0_19 = arith.constant 0 : index
      %c0_20 = arith.constant 0 : index
      %c0_21 = arith.constant 0 : index
      %c0_22 = arith.constant 0 : index
      %34 = vector.load %arg6[%c0_19, %c0_20, %c0_21, %c0_22] : memref<2x2x4x128xf32, #tpu.memory_space<vmem>>, vector<1x1x4x128xf32>
      %35 = vector.shape_cast %34 : vector<1x1x4x128xf32> to vector<4x128xf32>
      %36 = vector.shape_cast %33 : vector<4x128xf32> to vector<1x1x4x128xf32>
      tpu.vector_store %arg6[%c0_19, %c0_20, %c0_21, %c0_22], %36 {strides = array<i32>} : memref<2x2x4x128xf32, #tpu.memory_space<vmem>>, vector<1x1x4x128xf32>,
      %37 = vector.extract_strided_slice %15 {offsets = [1, 0, 0], sizes = [1, 4, 1], strides = [1, 1, 1]} : vector<2x4x1xf32> to vector<1x4x1xf32>
      %38 = vector.shape_cast %37 : vector<1x4x1xf32> to vector<4x1xf32>
      %39 = vector.broadcast %38 : vector<4x1xf32> to vector<4x128xf32>
      %40 = arith.mulf %25, %39 : vector<4x128xf32>
      %41 = vector.extract_strided_slice %16 {offsets = [1, 0, 0], sizes = [1, 4, 1], strides = [1, 1, 1]} : vector<2x4x1xf32> to vector<1x4x1xf32>
      %42 = vector.shape_cast %41 : vector<1x4x1xf32> to vector<4x1xf32>
      %43 = vector.broadcast %42 : vector<4x1xf32> to vector<4x128xf32>
      %44 = arith.addf %40, %43 : vector<4x128xf32>
      %c0_23 = arith.constant 0 : index
      %c1 = arith.constant 1 : index
      %c0_24 = arith.constant 0 : index
      %c0_25 = arith.constant 0 : index
      %45 = vector.load %arg6[%c0_23, %c1, %c0_24, %c0_25] : memref<2x2x4x128xf32, #tpu.memory_space<vmem>>, vector<1x1x4x128xf32>
      %46 = vector.shape_cast %45 : vector<1x1x4x128xf32> to vector<4x128xf32>
      %47 = vector.shape_cast %44 : vector<4x128xf32> to vector<1x1x4x128xf32>
      tpu.vector_store %arg6[%c0_23, %c1, %c0_24, %c0_25], %47 {strides = array<i32>} : memref<2x2x4x128xf32, #tpu.memory_space<vmem>>, vector<1x1x4x128xf32>,
      %c2_i32_26 = arith.constant 2 : i32
      %48 = arith.addi %3, %c2_i32_26 : i32
      %49 = arith.index_cast %48 : i32 to index
      %c0_27 = arith.constant 0 : index
      %c0_28 = arith.constant 0 : index
      %50 = vector.load %arg11[%49, %c0_27, %c0_28] : memref<4x4x128xf32, #tpu.memory_space<vmem>>, vector<1x4x128xf32>
      %51 = vector.shape_cast %50 : vector<1x4x128xf32> to vector<4x128xf32>
      %c2_i32_29 = arith.constant 2 : i32
      %52 = arith.addi %3, %c2_i32_29 : i32
      %c1_i32_30 = arith.constant 1 : i32
      %53 = arith.addi %52, %c1_i32_30 : i32
      %54 = arith.index_cast %53 : i32 to index
      %c0_31 = arith.constant 0 : index
      %c0_32 = arith.constant 0 : index
      %55 = vector.load %arg11[%54, %c0_31, %c0_32] : memref<4x4x128xf32, #tpu.memory_space<vmem>>, vector<1x4x128xf32>
      %56 = vector.shape_cast %55 : vector<1x4x128xf32> to vector<4x128xf32>
      %57 = vector.extract_strided_slice %15 {offsets = [0, 0, 0], sizes = [1, 4, 1], strides = [1, 1, 1]} : vector<2x4x1xf32> to vector<1x4x1xf32>
      %58 = vector.shape_cast %57 : vector<1x4x1xf32> to vector<4x1xf32>
      %59 = vector.broadcast %58 : vector<4x1xf32> to vector<4x128xf32>
      %60 = arith.mulf %51, %59 : vector<4x128xf32>
      %61 = vector.extract_strided_slice %16 {offsets = [0, 0, 0], sizes = [1, 4, 1], strides = [1, 1, 1]} : vector<2x4x1xf32> to vector<1x4x1xf32>
      %62 = vector.shape_cast %61 : vector<1x4x1xf32> to vector<4x1xf32>
      %63 = vector.broadcast %62 : vector<4x1xf32> to vector<4x128xf32>
      %64 = arith.addf %60, %63 : vector<4x128xf32>
      %c1_33 = arith.constant 1 : index
      %c0_34 = arith.constant 0 : index
      %c0_35 = arith.constant 0 : index
      %c0_36 = arith.constant 0 : index
      %65 = vector.load %arg6[%c1_33, %c0_34, %c0_35, %c0_36] : memref<2x2x4x128xf32, #tpu.memory_space<vmem>>, vector<1x1x4x128xf32>
      %66 = vector.shape_cast %65 : vector<1x1x4x128xf32> to vector<4x128xf32>
      %67 = vector.shape_cast %64 : vector<4x128xf32> to vector<1x1x4x128xf32>
      tpu.vector_store %arg6[%c1_33, %c0_34, %c0_35, %c0_36], %67 {strides = array<i32>} : memref<2x2x4x128xf32, #tpu.memory_space<vmem>>, vector<1x1x4x128xf32>,
      %68 = vector.extract_strided_slice %15 {offsets = [1, 0, 0], sizes = [1, 4, 1], strides = [1, 1, 1]} : vector<2x4x1xf32> to vector<1x4x1xf32>
      %69 = vector.shape_cast %68 : vector<1x4x1xf32> to vector<4x1xf32>
      %70 = vector.broadcast %69 : vector<4x1xf32> to vector<4x128xf32>
      %71 = arith.mulf %56, %70 : vector<4x128xf32>
      %72 = vector.extract_strided_slice %16 {offsets = [1, 0, 0], sizes = [1, 4, 1], strides = [1, 1, 1]} : vector<2x4x1xf32> to vector<1x4x1xf32>
      %73 = vector.shape_cast %72 : vector<1x4x1xf32> to vector<4x1xf32>
      %74 = vector.broadcast %73 : vector<4x1xf32> to vector<4x128xf32>
      %75 = arith.addf %71, %74 : vector<4x128xf32>
      %c1_37 = arith.constant 1 : index
      %c1_38 = arith.constant 1 : index
      %c0_39 = arith.constant 0 : index
      %c0_40 = arith.constant 0 : index
      %76 = vector.load %arg6[%c1_37, %c1_38, %c0_39, %c0_40] : memref<2x2x4x128xf32, #tpu.memory_space<vmem>>, vector<1x1x4x128xf32>
      %77 = vector.shape_cast %76 : vector<1x1x4x128xf32> to vector<4x128xf32>
      %78 = vector.shape_cast %75 : vector<4x128xf32> to vector<1x1x4x128xf32>
      tpu.vector_store %arg6[%c1_37, %c1_38, %c0_39, %c0_40], %78 {strides = array<i32>} : memref<2x2x4x128xf32, #tpu.memory_space<vmem>>, vector<1x1x4x128xf32>,
    } else {
    }
    return
  }
  func.func @transform_0(%arg0: i32, %arg1: i32, %arg2: i32) -> (i32, i32, i32, i32) {
    %c1_i32 = arith.constant 1 : i32
    %0 = arith.subi %c1_i32, %arg0 : i32
    %1 = arith.muli %arg1, %0 : i32
    %c1_i32_0 = arith.constant 1 : i32
    %2 = arith.subi %c1_i32_0, %arg0 : i32
    %3 = arith.muli %arg2, %2 : i32
    %c0_i32 = arith.constant 0 : i32
    %c0_i32_1 = arith.constant 0 : i32
    %c0_i32_2 = arith.constant 0 : i32
    return %1, %c0_i32, %c0_i32_1, %3 : i32, i32, i32, i32
  }
  func.func @transform_1(%arg0: i32, %arg1: i32, %arg2: i32) -> (i32, i32, i32) {
    %c0_i32 = arith.constant 0 : i32
    %c0_i32_0 = arith.constant 0 : i32
    %c0_i32_1 = arith.constant 0 : i32
    %c0_i32_2 = arith.constant 0 : i32
    return %c0_i32, %c0_i32_0, %c0_i32_1 : i32, i32, i32
  }
  func.func @transform_2(%arg0: i32, %arg1: i32, %arg2: i32) -> (i32, i32, i32, i32) {
    %c0_i32 = arith.constant 0 : i32
    %c0_i32_0 = arith.constant 0 : i32
    %c0_i32_1 = arith.constant 0 : i32
    %c0_i32_2 = arith.constant 0 : i32
    %c0_i32_3 = arith.constant 0 : i32
    return %c0_i32, %c0_i32_0, %c0_i32_1, %c0_i32_2 : i32, i32, i32, i32
  }
  func.func @transform_3(%arg0: i32, %arg1: i32, %arg2: i32) -> (i32, i32, i32, i32) {
    %0 = arith.muli %arg1, %arg0 : i32
    %1 = arith.muli %arg2, %arg0 : i32
    %c0_i32 = arith.constant 0 : i32
    %c0_i32_0 = arith.constant 0 : i32
    %c0_i32_1 = arith.constant 0 : i32
    return %0, %c0_i32, %c0_i32_0, %1 : i32, i32, i32, i32
  }
}

</mosaic_0001>

<bundles_post_ra>
// kernel: factorized_reduce.1
= control target key start
LH: loop header
LB: loop body
LE: loop exit
PB: predicated region body
PF: predicated region fallthrough
CT: control target
= control target key end

     0   :  { %s901_s12 = smov 0   ;;  %s903_s13 = smov 0   ;;  %s992_s0 = inlined_call_operand.vmem [shape: bf16[2,2,4,128], index: 0, kind: input, shape index: {}]   ;;  %s993_s1 = inlined_call_operand.vmem [shape: bf16[2,4,4], index: 1, kind: input, shape index: {}]   ;;  %s994_s2 = inlined_call_operand.vmem [shape: f32[2,2,4,1], index: 2, kind: input, shape index: {}]   ;;  %s995_s3 = inlined_call_operand.vmem [shape: f32[2,2,4,128], index: 3, kind: output, shape index: {}]  }
   0x1   :  { %s905_s14 = smov 0  }
   0x2 LB: > { %s32_s15 = sadd.s32 1, %s871_s13  ;;  %p760_p0 = scmp.ge.s32.totalorder %s875_s14, 1  ;;  %s875_s14 = sphi %s905_s14, %s13_s14   ;;  %s871_s13 = sphi %s903_s13, %s997_s13   ;;  %s867_s12 = sphi %s901_s12, %s996_s12  }
   0x3   : > { %p34_p1 = scmp.ge.s32.totalorder %s32_s15, 2  ;;  %p181_p2 = scmp.lt.s32.totalorder %s875_s14, 3 }
   0x5   : > { %s999_s15 = smov (%p34_p1, %s32_s15), 0  ;;  %p182_p3 = pnand %p760_p0, %p181_p2 }
   0x6   : > { %p761_p4 = scmp.ne.s32.totalorder (!%p182_p3), %s867_s12, 0 }
   0x7   : > { %185 = sbr.rel (%p182_p3) target bundleno = 570 (0x23a), region = 32 }
   0xe   : > { %254 = sbr.rel (%p761_p4) target bundleno = 249 (0xf9), region = 36  ;;  %v265_v0 = vld [vmem:[%s992_s0] sm:$0x3] (!%p761_p4)  ;;  %vm275_vm0 = vcmask (!%p761_p4), 1041408   ;;  %v877_v1 = vmov (!%p761_p4), 0.0   ;;  %v878_v2 = vmov (!%p761_p4), 0  }
   0xf   : > { %795 = vmatprep.subr.bf16.mxu0 (!%p761_p4), %v877_v1  ;;  %261 = vst [vmem:[#allocation2] sm:$0xf] (!%p761_p4), %v877_v1  ;;  %262 = vst [vmem:[#allocation2 + $0x4] sm:$0xf] (!%p761_p4), %v877_v1  ;;  %801 = vmatprep.subr.bf16.mxu1 (!%p761_p4), %v877_v1  ;;  %v266_v3 = vmax.bf16 (!%p761_p4), %v878_v2, %v265_v0  ;;  %v762_v4 = vld [vmem:[%s992_s0 + $0x2] sm:$0x3] (!%p761_p4) }
  0x10   : > { %263 = vst [vmem:[#allocation3] sm:$0xf] (!%p761_p4), %v877_v1  ;;  %264 = vst [vmem:[#allocation3 + $0x4] sm:$0xf] (!%p761_p4), %v877_v1  ;;  %v269_v5 = vmax.bf16 (!%p761_p4), %v878_v2, %v762_v4  ;;  %vm879_vm1 = vmmov (!%p761_p4), 0   ;;  %vm271_vm2 = vcmask (!%p761_p4), 31744  }
  0x11   : > { %797 = vmatprep.mubr.msk.bf16.mxu0 (!%p761_p4), %vm879_vm1, %v877_v1  ;;  %803 = vmatprep.mubr.msk.bf16.mxu1 (!%p761_p4), %vm879_vm1, %v877_v1  ;;  %v767_v6 = vld [vmem:[%s992_s0 + $0x4] sm:$0x3] (!%p761_p4)  ;;  %v768_v7 = vld [vmem:[%s992_s0 + $0x6] sm:$0x3] (!%p761_p4)  ;;  %v277_v8 = vsel (!%p761_p4), %vm275_vm0, %v266_v3, 0 }
  0x12   : > { %v392_v9 = vmax.bf16 (!%p761_p4), %v878_v2, %v767_v6  ;;  %v395_v10 = vmax.bf16 (!%p761_p4), %v878_v2, %v768_v7  ;;  %796 = vmatpush3.bf16.msra.mxu0 (!%p761_p4), %v277_v8  ;;  %v325_v11 = vsel (!%p761_p4), %vm275_vm0, %v269_v5, 0  ;;  %v270_v12 = vld [vmem:[%s993_s1] sm:$0x3] (!%p761_p4)  ;;  %v764_v13 = vld [vmem:[%s993_s1 + $0x2] sm:$0x3] (!%p761_p4) }
  0x13   : > { %802 = vmatpush3.bf16.msra.mxu1 (!%p761_p4), %v325_v11  ;;  %807 = vmatprep.subr.bf16.mxu0 (!%p761_p4), %v877_v1  ;;  %v396_v16 = vld [vmem:[%s993_s1] sm:$0x3] (!%p761_p4)  ;;  %v770_v17 = vld [vmem:[%s993_s1 + $0x2] sm:$0x3] (!%p761_p4) }
  0x14   : > { %v401_v14 = vsel (!%p761_p4), %vm275_vm0, %v392_v9, 0  ;;  %813 = vmatprep.subr.bf16.mxu1 (!%p761_p4), %v877_v1  ;;  %v448_v15 = vsel (!%p761_p4), %vm275_vm0, %v395_v10, 0 }
  0x15   : > { %798 = vmatmul.mubr.msk.bf16.vlgmr.msra.gmra.mrb[0].mxu0 %vm271_vm2, %v270_v12 }
  0x16   : > { %804 = vmatmul.mubr.msk.bf16.vlgmr.msra.gmra.mrb[0].mxu1 %vm271_vm2, %v764_v13  ;;  %808 = vmatpush3.bf16.msra.mxu0 %v401_v14  ;;  %v367_v18 = vld [vmem:[#allocation2] sm:$0xf]  ;;  %v371_v19 = vld [vmem:[#allocation2 + $0x4] sm:$0xf] }
  0x17   : > { %814 = vmatpush3.bf16.msra.mxu1 %v448_v15  ;;  %809 = vmatprep.mubr.msk.bf16.mxu0 %vm879_vm1, %v877_v1  ;;  %v374_v21 = vld [vmem:[#allocation3] sm:$0xf]  ;;  %v379_v25 = vld [vmem:[#allocation3 + $0x4] sm:$0xf] }
  0x18   : > { %815 = vmatprep.mubr.msk.bf16.mxu1 %vm879_vm1, %v877_v1 }
  0x1d   : > { %810 = vmatmul.mubr.msk.bf16.vlgmr.msra.gmra.mrb[4].mxu0 %vm271_vm2, %v396_v16 }
  0x1e   : > { %816 = vmatmul.mubr.msk.bf16.vlgmr.msra.gmra.mrb[4].mxu1 %vm271_vm2, %v770_v17 }
  0xe8   : > { %v313_v20 = vpop.f32.mrb[0].mxu0 }
  0xe9   : > { %v368_v22 = vadd.f32 %v367_v18, %v313_v20  ;;  %v375_v23 = vmul.f32 %v313_v20, %v313_v20  ;;  %385 = vst [vmem:[#allocation6] sm:$0xf] %v313_v20  ;;  %v361_v24 = vpop.f32.mrb[0].mxu1  ;;  %v799_v26 = vpop.f32.mrb[1].mxu0 }
  0xea   : > { %v372_v27 = vadd.f32 %v371_v19, %v361_v24  ;;  %v380_v28 = vmul.f32 %v361_v24, %v361_v24  ;;  %766 = vst [vmem:[#allocation6 + $0x4] sm:$0xf] %v361_v24  ;;  %v805_v29 = vpop.f32.mrb[1].mxu1  ;;  %v316_v30 = vpop.f32.mrb[2].mxu0 }
  0xeb   : > { %369 = vst [vmem:[#allocation2] sm:$0xf] %v368_v22  ;;  %v376_v31 = vadd.f32 %v375_v23, %v374_v21  ;;  %v364_v32 = vpop.f32.mrb[2].mxu1  ;;  %v800_v33 = vpop.f32.mrb[3].mxu0 }
  0xec   : > { %373 = vst [vmem:[#allocation2 + $0x4] sm:$0xf] %v372_v27  ;;  %v381_v34 = vadd.f32 %v380_v28, %v379_v25  ;;  %v806_v35 = vpop.f32.mrb[3].mxu1 }
  0xed   : > { %377 = vst [vmem:[#allocation3] sm:$0xf] %v376_v31 }
  0xee   : > { %382 = vst [vmem:[#allocation3 + $0x4] sm:$0xf] %v381_v34 }
  0xf0   : > { %v437_v36 = vpop.f32.mrb[4].mxu0 }
  0xf1   : > { %v497_v37 = vmul.f32 %v437_v36, %v437_v36  ;;  %772 = vst [vmem:[#allocation6 + $0x8] sm:$0xf] %v437_v36  ;;  %v484_v38 = vpop.f32.mrb[4].mxu1  ;;  %v811_v39 = vpop.f32.mrb[5].mxu0 }
  0xf2   : > { %v490_v40 = vld [vmem:[#allocation2] sm:$0xf]  ;;  %v501_v41 = vmul.f32 %v484_v38, %v484_v38  ;;  %773 = vst [vmem:[#allocation6 + $0xc] sm:$0xf] %v484_v38  ;;  %v817_v42 = vpop.f32.mrb[5].mxu1  ;;  %v440_v43 = vpop.f32.mrb[6].mxu0 }
  0xf3   : > { %v491_v44 = vadd.f32 %v490_v40, %v437_v36  ;;  %v493_v45 = vld [vmem:[#allocation2 + $0x4] sm:$0xf]  ;;  %v487_v46 = vpop.f32.mrb[6].mxu1  ;;  %v812_v47 = vpop.f32.mrb[7].mxu0 }
  0xf4   : > { %v496_v48 = vld [vmem:[#allocation3] sm:$0xf]  ;;  %v494_v49 = vadd.f32 %v493_v45, %v484_v38  ;;  %v818_v50 = vpop.f32.mrb[7].mxu1 }
  0xf5   : > { %492 = vst [vmem:[#allocation2] sm:$0xf] %v491_v44  ;;  %v498_v51 = vadd.f32 %v497_v37, %v496_v48  ;;  %v500_v52 = vld [vmem:[#allocation3 + $0x4] sm:$0xf] }
  0xf6   : > { %495 = vst [vmem:[#allocation2 + $0x4] sm:$0xf] %v494_v49  ;;  %v502_v53 = vadd.f32 %v501_v41, %v500_v52 }
  0xf7   : > { %499 = vst [vmem:[#allocation3] sm:$0xf] %v498_v51 }
  0xf8   : > { %503 = vst [vmem:[#allocation3 + $0x4] sm:$0xf] %v502_v53 }
  0xf9 PF: > { %p774_p5 = scmp.ne.s32.totalorder %s867_s12, 1 }
  0xfa   : > { %vm524_vm3 = vcmask (!%p774_p5), 1043456   ;;  %v880_v62 = vmov (!%p774_p5), 0   ;;  %v553_v15 = vld [vmem:[%s994_s2] sm:$0xf] (!%p774_p5)  ;;  %vm557_vm4 = vcmask (!%p774_p5), 3072  }
  0xfb   : > { %515 = sbr.rel (%p774_p5) target bundleno = 570 (0x23a), region = 44  ;;  %847 = vset.pattern.permute.xlu0 (!%p774_p5), %v880_v62  ;;  %848 = vset.pattern.permute.xlu1 (!%p774_p5), %v880_v62  ;;  %v775_v18 = vld [vmem:[%s994_s2 + $0x8] sm:$0xf] (!%p774_p5)  ;;  %v554_v19 = vld [vmem:[%s994_s2 + $0x4] sm:$0xf] (!%p774_p5) }
  0xfc   : > { %v522_v54 = vld [vmem:[#allocation2] sm:$0xf] (!%p774_p5)  ;;  %v776_v24 = vld [vmem:[%s994_s2 + $0xc] sm:$0xf] (!%p774_p5)  ;;  %v779_v32 = vld [vmem:[#allocation6 + $0x8] sm:$0xf] (!%p774_p5) }
  0xfd   : > { %v525_v56 = vsel (!%p774_p5), %vm524_vm3, %v522_v54, 0.0  ;;  %v523_v58 = vld [vmem:[#allocation2 + $0x4] sm:$0xf] (!%p774_p5)  ;;  %v575_v31 = vld [vmem:[#allocation6] sm:$0xf] (!%p774_p5) }
  0xfe   : > { %v531_v55 = vld [vmem:[#allocation3] sm:$0xf] (!%p774_p5)  ;;  %526 = vadd.xlane.f32.xlu0 (!%p774_p5), %v525_v56  ;;  %v528_v60 = vsel (!%p774_p5), %vm524_vm3, %v523_v58, 0.0  ;;  %v777_v37 = vld [vmem:[#allocation6 + $0x4] sm:$0xf] (!%p774_p5) }
  0xff   : > { %v533_v57 = vsel (!%p774_p5), %vm524_vm3, %v531_v55, 0.0  ;;  %v532_v59 = vld [vmem:[#allocation3 + $0x4] sm:$0xf] (!%p774_p5) }
 0x100   : > { %534 = vadd.xlane.f32.xlu1 (!%p774_p5), %v533_v57  ;;  %v536_v61 = vsel (!%p774_p5), %vm524_vm3, %v532_v59, 0.0  ;;  %v780_v38 = vld [vmem:[#allocation6 + $0xc] sm:$0xf] (!%p774_p5) }
 0x102   : > { %529 = vadd.xlane.f32.xlu0 %v528_v60 }
 0x104   : > { %537 = vadd.xlane.f32.xlu1 %v536_v61 }
 0x18b   : > { %v527_v63 = vpop.xlane.xlu0 %526 }
 0x18c   : > { %v539_v1 = vmul.f32 0.0078125, %v527_v63 }
 0x18d   : > { %v535_v0 = vpop.xlane.xlu1 %534 }
 0x18e   : > { %v541_v2 = vmul.f32 0.0078125, %v535_v0  ;;  %v543_v3 = vmul.f32 %v539_v1, %v539_v1 }
 0x18f   : > { %v530_v4 = vpop.xlane.xlu0 %529 }
 0x190   : > { %v545_v6 = vsub.f32 %v541_v2, %v543_v3  ;;  %v540_v7 = vmul.f32 0.0078125, %v530_v4 }
 0x191   : > { %v538_v5 = vpop.xlane.xlu1 %537 }
 0x192   : > { %v542_v8 = vmul.f32 0.0078125, %v538_v5  ;;  %v547_v9 = vmax.f32 %v545_v6, 0.0  ;;  %v544_v10 = vmul.f32 %v540_v7, %v540_v7 }
 0x194   : > { %v549_v11 = vadd.f32 1e-05, %v547_v9  ;;  %v546_v12 = vsub.f32 %v542_v8, %v544_v10 }
 0x196   : > { %849 = vrsqrt.f32 %v549_v11  ;;  %v548_v13 = vmax.f32 %v546_v12, 0.0 }
 0x198   : > { %v550_v14 = vadd.f32 1e-05, %v548_v13 }
 0x19a   : > { %851 = vrsqrt.f32 %v550_v14 }
 0x1a0   : > { %v850_v16 = vpop.eup %849 }
 0x1a1   : > { %v555_v17 = vmul.f32 %v850_v16, %v553_v15 }
 0x1a3   : > { %558 = vst.msk [vmem:[#allocation4] sm:$0xf] %vm557_vm4, %v555_v17  ;;  %v563_v20 = vmul.f32 %v555_v17, %v539_v1 }
 0x1a4   : > { %v852_v21 = vpop.eup %851 }
 0x1a5   : > { %v565_v22 = vsub.f32 %v775_v18, %v563_v20  ;;  %v556_v23 = vmul.f32 %v852_v21, %v554_v19 }
 0x1a7   : > { %567 = vst.msk [vmem:[#allocation5] sm:$0xf] %vm557_vm4, %v565_v22  ;;  %559 = vst.msk [vmem:[#allocation4 + $0x4] sm:$0xf] %vm557_vm4, %v556_v23  ;;  %v564_v25 = vmul.f32 %v556_v23, %v540_v7 }
 0x1a9   : > { %v566_v26 = vsub.f32 %v776_v24, %v564_v25 }
 0x1aa   : > { %v569_v27 = vld [vmem:[#allocation4] sm:$0xf] }
 0x1ab   : > { %568 = vst.msk [vmem:[#allocation5 + $0x4] sm:$0xf] %vm557_vm4, %v566_v26  ;;  %582 = vperm.xlu0 %847, %v569_v27  }
 0x1ae   : > { %v570_v28 = vld [vmem:[#allocation4 + $0x4] sm:$0xf]  ;;  %v571_v29 = vld [vmem:[#allocation5] sm:$0xf] }
 0x1af   : > { %595 = vperm.xlu1 %848, %v570_v28  }
 0x1b2   : > { %v572_v30 = vld [vmem:[#allocation5 + $0x4] sm:$0xf] }
 0x1b3   : > { %588 = vperm.xlu1 %848, %v571_v29  }
 0x1b7   : > { %601 = vperm.xlu1 %848, %v572_v30  }
 0x22a   : > { %v583_v33 = vpop.permute.xlu0 %582 }
 0x22b   : > { %v585_v35 = vmul.f32 %v583_v33, %v575_v31  ;;  %v615_v36 = vmul.f32 %v779_v32, %v583_v33 }
 0x22e   : > { %v596_v34 = vpop.permute.xlu1 %595 }
 0x22f   : > { %v598_v42 = vmul.f32 %v777_v37, %v596_v34  ;;  %v619_v43 = vmul.f32 %v780_v38, %v596_v34 }
 0x232   : > { %v589_v39 = vpop.permute.xlu1 %588 }
 0x233   : > { %v591_v40 = vadd.f32 %v589_v39, %v585_v35  ;;  %v616_v41 = vadd.f32 %v615_v36, %v589_v39 }
 0x235   : > { %592 = vst [vmem:[%s995_s3] sm:$0xf] %v591_v40  ;;  %781 = vst [vmem:[%s995_s3 + $0x8] sm:$0xf] %v616_v41 }
 0x236   : > { %v602_v44 = vpop.permute.xlu1 %601 }
 0x237   : > { %v604_v45 = vadd.f32 %v602_v44, %v598_v42  ;;  %v620_v46 = vadd.f32 %v619_v43, %v602_v44 }
 0x239   : > { %778 = vst [vmem:[%s995_s3 + $0x4] sm:$0xf] %v604_v45  ;;  %782 = vst [vmem:[%s995_s3 + $0xc] sm:$0xf] %v620_v46 }
 0x23a PF: > { %s13_s14 = sadd.s32 1, %s875_s14   ;;  %s996_s12 = smov %s871_s13 }
 0x23b   : > { %p10_p6 = scmp.ge.s32.totalorder %s13_s14, 4   ;;  %s997_s13 = smov %s999_s15 }
 0x23d   :  { %12 = sbr.rel (!%p10_p6) target bundleno = 2 (0x2), region = 96 }

</bundles_post_ra>
